<compile_context>
chip_gen: v7x
topology: tpu7x:2x2x1
jax: 0.10.0
libtpu: 0.0.40
codegen_flags: <defaults>
</compile_context>

<pallas_src>
import functools

import jax
import jax.numpy as jnp
import numpy as np
from jax.experimental import pallas as pl
from jax.experimental.pallas import tpu as pltpu

_LANES = 128


def _gdl_partial_kernel(x_ref, t_ref, ts_ref, is_ref, ps_ref, *,
                        valid_m, r_tile, tiles_per_part, ragged):
    """Accumulate per-class lane-dense partial sums for one (part, sample)."""
    p_idx = pl.program_id(0)          # megacore part
    t_idx = pl.program_id(2)          # R-tile index within this part

    @pl.when(t_idx == 0)
    def _():
        ts_ref[...] = jnp.zeros_like(ts_ref)
        is_ref[...] = jnp.zeros_like(is_ref)
        ps_ref[...] = jnp.zeros_like(ps_ref)

    x = x_ref[...].astype(jnp.float32)        # (C, r_tile, 128), native-dtype DMA
    t = t_ref[...].astype(jnp.float32)
    p = jax.nn.sigmoid(x)                     # normalization (nn.Sigmoid)

    def accumulate(pp, tt):
        # Sublane-axis reduction only; accumulators stay lane-dense (C, 128).
        ts_ref[...] += jnp.sum(tt, axis=1)          # target.sum
        is_ref[...] += jnp.sum(pp * tt, axis=1)     # (p * target).sum
        ps_ref[...] += jnp.sum(pp, axis=1)          # p.sum

    if not ragged:
        # Everything divides evenly: no masking code at all.
        accumulate(p, t)
    else:
        # Global element offset of this tile (from the *unclamped* logical tile id,
        # so duplicated/clamped tiles of the last part mask themselves out fully).
        tile_start = (p_idx * tiles_per_part + t_idx) * (r_tile * _LANES)
        needs_mask = tile_start + r_tile * _LANES > valid_m

        @pl.when(jnp.logical_not(needs_mask))
        def _():
            accumulate(p, t)

        @pl.when(needs_mask)
        def _():
            # Elements past `valid_m` hold padding / out-of-bounds garbage and must
            # not contribute (select, not multiply, so NaN garbage is safe).
            row = jax.lax.broadcasted_iota(jnp.int32, p.shape, 1)
            col = jax.lax.broadcasted_iota(jnp.int32, p.shape, 2)
            mask = tile_start + row * _LANES + col < valid_m
            accumulate(jnp.where(mask, p, 0.0), jnp.where(mask, t, 0.0))


def _default_vmem_budget():
    """Per-chip (input budget, vmem limit) in bytes."""
    try:
        cap = int(pltpu.get_tpu_info().vmem_capacity_bytes)
    except Exception:
        cap = 64 * 1024 * 1024
    if cap >= 96 * 1024 * 1024:                 # v5e / v6e: 128 MiB physical VMEM
        return 40 * 1024 * 1024, 80 * 1024 * 1024
    # v7x (64 MiB per TC, both TCs busy) and unknown chips: stay conservative.
    return 20 * 1024 * 1024, 32 * 1024 * 1024


def generalized_dice_loss(inp, target, epsilon=1e-5,
                          vmem_budget_bytes=None, vmem_limit_bytes=None):
    """inp, target: (N, C, *spatial) arrays of identical shape (any rank >= 2)."""
    assert inp.shape == target.shape, "'input' and 'target' must have the same shape"
    # TODO(synk): only the default module config is implemented (sigmoid
    # normalization, weight=None, ignore_index=None); softmax / ignore_index /
    # per-class weight branches are not translated.
    if vmem_budget_bytes is None or vmem_limit_bytes is None:
        auto_budget, auto_limit = _default_vmem_budget()
        vmem_budget_bytes = vmem_budget_bytes or auto_budget
        vmem_limit_bytes = vmem_limit_bytes or auto_limit

    N, C = int(inp.shape[0]), int(inp.shape[1])
    M = int(np.prod(inp.shape[2:])) if inp.ndim > 2 else 1

    # Free reshape (N, C, spatial...) -> (N, C, M); no transpose, no upcast.
    x = inp.reshape(N, C, M)
    t = target.reshape(N, C, M)

    # Lane-dense layout: (N, C, M) -> (N, C, R, 128) so spatial rows fill the
    # sublanes.  Pad (one copy) only when M is not a multiple of 128; the kernel
    # masks padded columns.
    r_total = pl.cdiv(M, _LANES)
    if M % _LANES != 0:
        # TODO(synk): padding copies the inputs once; a separate tail kernel could
        # avoid it, but typical image volumes have M % 128 == 0.
        pad = r_total * _LANES - M
        x = jnp.pad(x, ((0, 0), (0, 0), (0, pad)))
        t = jnp.pad(t, ((0, 0), (0, 0), (0, pad)))
    x = x.reshape(N, C, r_total, _LANES)
    t = t.reshape(N, C, r_total, _LANES)

    # Tile the R axis.  Effective VMEM per element: 2 arrays x 2 pipeline buffers of
    # native dtype + ~4 f32 intermediates (x_f32, t_f32, p, p*t) for the live tile.
    elem_bytes = 2 * (x.dtype.itemsize + t.dtype.itemsize) + 4 * 4
    bytes_per_row = C * _LANES * elem_bytes
    # Multiple of 32 rows keeps f32/bf16/int8 sublane tiling unpadded.
    r_tile = max(32, (vmem_budget_bytes // bytes_per_row) // 32 * 32)
    if r_tile >= r_total:
        r_tile = r_total                        # single full-height tile
    n_r_blocks = pl.cdiv(r_total, r_tile)

    # Megacore coverage: with a single batch sample, split the R-tile range across a
    # leading "parallel" axis so both v7x TensorCores get work.  (On 1-TC chips this
    # costs at most one duplicated -- fully masked -- tile.)
    n_parts = 2 if (N == 1 and n_r_blocks >= 2) else 1
    tiles_per_part = pl.cdiv(n_r_blocks, n_parts)

    ragged = (M != r_total * _LANES
              or r_total % r_tile != 0
              or n_parts * tiles_per_part != n_r_blocks)

    def in_map(p, n, i):
        # Clamp so duplicated trailing tiles of the last part re-read the final block
        # (their contribution is fully masked in the kernel).
        r_blk = jnp.minimum(p * tiles_per_part + i, n_r_blocks - 1)
        return (n, 0, r_blk, 0)

    in_spec = pl.BlockSpec((None, C, r_tile, _LANES), in_map)
    out_spec = pl.BlockSpec((None, None, C, _LANES), lambda p, n, i: (p, n, 0, 0))
    part_shape = jax.ShapeDtypeStruct((n_parts, N, C, _LANES), jnp.float32)

    ts_p, is_p, ps_p = pl.pallas_call(
        functools.partial(_gdl_partial_kernel, valid_m=M, r_tile=r_tile,
                          tiles_per_part=tiles_per_part, ragged=ragged),
        out_shape=(part_shape, part_shape, part_shape),
        grid_spec=pltpu.PrefetchScalarGridSpec(
            num_scalar_prefetch=0,
            grid=(n_parts, N, tiles_per_part),
            in_specs=[in_spec, in_spec],
            out_specs=[out_spec, out_spec, out_spec],
        ),
        compiler_params=pltpu.CompilerParams(
            # (part, N) are independent -> "parallel"; the R-tile axis carries the
            # output-resident accumulators -> "arbitrary".
            dimension_semantics=("parallel", "parallel", "arbitrary"),
            vmem_limit_bytes=vmem_limit_bytes,
        ),
    )(x, t)

    # Tiny final combine (O(C * 128) work) in plain JAX: one cross-lane reduce here
    # instead of one per grid step inside the kernel.
    ts = jnp.sum(ts_p, axis=(0, 1, 3))           # (C,) target.sum(-1)
    inter_c = jnp.sum(is_p, axis=(0, 1, 3))      # (C,) (p*target).sum(-1)
    psum_c = jnp.sum(ps_p, axis=(0, 1, 3))       # (C,) p.sum(-1)
    w = 1.0 / jnp.maximum(ts * ts, epsilon)      # class_weights
    intersect = jnp.sum(inter_c * w)
    denominator = jnp.maximum(jnp.sum((psum_c + ts) * w), epsilon)
    return 1.0 - 2.0 * intersect / denominator


def _reference_gdl(inp, target, epsilon=1e-5):
    """Pure-JAX reference mirroring the PyTorch forward (incl. the flatten)."""
    C = inp.shape[1]
    perm = (1, 0) + tuple(range(2, inp.ndim))
    x = jax.nn.sigmoid(jnp.transpose(inp, perm).reshape(C, -1).astype(jnp.float32))
    t = jnp.transpose(target, perm).reshape(C, -1).astype(jnp.float32)
    ts = t.sum(-1)
    w = 1.0 / jnp.maximum(ts * ts, epsilon)
    intersect = ((x * t).sum(-1) * w).sum()
    denom = jnp.maximum(((x + t).sum(-1) * w).sum(), epsilon)
    return 1.0 - 2.0 * intersect / denom


if __name__ == "__main__":
    key = jax.random.PRNGKey(0)
    k1, k2, k3, k4, k5, k6 = jax.random.split(key, 6)

    gdl = jax.jit(generalized_dice_loss)

    # Case 1: f32 NCHW, spatial size a multiple of 128 (fast unmasked path).
    N, C, H, W = 2, 4, 16, 16
    logits = jax.random.normal(k1, (N, C, H, W), dtype=jnp.float32)
    labels = jax.random.randint(k2, (N, H, W), 0, C)
    target = jnp.transpose(jax.nn.one_hot(labels, C, dtype=jnp.float32), (0, 3, 1, 2))
    loss = jax.block_until_ready(gdl(logits, target))
    ref = jax.block_until_ready(_reference_gdl(logits, target))
    np.testing.assert_allclose(np.asarray(loss), np.asarray(ref), rtol=1e-5, atol=1e-6)

    # Case 2: ragged spatial size (masked tail), single batch sample.
    N2, C2, H2, W2 = 1, 3, 10, 10
    logits2 = jax.random.normal(k3, (N2, C2, H2, W2), dtype=jnp.float32)
    labels2 = jax.random.randint(k4, (N2, H2, W2), 0, C2)
    target2 = jnp.transpose(jax.nn.one_hot(labels2, C2, dtype=jnp.float32), (0, 3, 1, 2))
    loss2 = jax.block_until_ready(gdl(logits2, target2))
    ref2 = jax.block_until_ready(_reference_gdl(logits2, target2))
    np.testing.assert_allclose(np.asarray(loss2), np.asarray(ref2), rtol=1e-5, atol=1e-6)

    # Case 3: narrow dtypes at the HBM boundary (bf16 logits, int8 one-hot target);
    # the kernel DMAs native dtypes and does all math / accumulation in f32.
    N3, C3, H3, W3 = 2, 4, 64, 64
    logits3 = jax.random.normal(k5, (N3, C3, H3, W3)).astype(jnp.bfloat16)
    labels3 = jax.random.randint(k6, (N3, H3, W3), 0, C3)
    target3 = jnp.transpose(jax.nn.one_hot(labels3, C3, dtype=jnp.int8), (0, 3, 1, 2))
    loss3 = jax.block_until_ready(gdl(logits3, target3))
    ref3 = jax.block_until_ready(_reference_gdl(logits3, target3))
    np.testing.assert_allclose(np.asarray(loss3), np.asarray(ref3), rtol=1e-4, atol=1e-5)

    print("KERNEL_OK")
</pallas_src>

<mosaic_0001>
module attributes {stable_mosaic.version = 11 : i64} {
  func.func @_gdl_partial_kernel(%arg0: i32, %arg1: i32, %arg2: i32, %arg3: memref<1x4x2x128xf32, #tpu.memory_space<vmem>>, %arg4: memref<1x4x2x128xf32, #tpu.memory_space<vmem>>, %arg5: memref<1x1x4x128xf32, #tpu.memory_space<vmem>>, %arg6: memref<1x1x4x128xf32, #tpu.memory_space<vmem>>, %arg7: memref<1x1x4x128xf32, #tpu.memory_space<vmem>>) attributes {dimension_semantics = [#tpu.dimension_semantics<parallel>, #tpu.dimension_semantics<parallel>, #tpu.dimension_semantics<arbitrary>], iteration_bounds = array<i64: 1, 2, 1>, scalar_prefetch = 0 : i64, scratch_operands = 0 : i64, tpu.core_type = #tpu.core_type<tc>, window_params = [{transform_indices = @transform_0, window_bounds = array<i64: 1, 4, 2, 128>}, {transform_indices = @transform_1, window_bounds = array<i64: 1, 4, 2, 128>}, {transform_indices = @transform_2, window_bounds = array<i64: 1, 1, 4, 128>}, {transform_indices = @transform_3, window_bounds = array<i64: 1, 1, 4, 128>}, {transform_indices = @transform_4, window_bounds = array<i64: 1, 1, 4, 128>}]} {
    %c0_i32 = arith.constant 0 : i32
    %0 = arith.cmpi eq, %arg2, %c0_i32 : i32
    %1 = arith.extui %0 : i1 to i32
    %c0_i32_0 = arith.constant 0 : i32
    %2 = arith.cmpi ne, %1, %c0_i32_0 : i32
    scf.if %2 {
      %cst_35 = arith.constant 0.000000e+00 : f32
      %34 = vector.broadcast %cst_35 : f32 to vector<4x128xf32>
      %c0_36 = arith.constant 0 : index
      %c0_37 = arith.constant 0 : index
      %c0_38 = arith.constant 0 : index
      %c0_39 = arith.constant 0 : index
      %35 = vector.load %arg5[%c0_36, %c0_37, %c0_38, %c0_39] : memref<1x1x4x128xf32, #tpu.memory_space<vmem>>, vector<1x1x4x128xf32>
      %36 = vector.shape_cast %35 : vector<1x1x4x128xf32> to vector<4x128xf32>
      %37 = vector.shape_cast %34 : vector<4x128xf32> to vector<1x1x4x128xf32>
      tpu.vector_store %arg5[%c0_36, %c0_37, %c0_38, %c0_39], %37 {strides = array<i32>} : memref<1x1x4x128xf32, #tpu.memory_space<vmem>>, vector<1x1x4x128xf32>,
      %cst_40 = arith.constant 0.000000e+00 : f32
      %38 = vector.broadcast %cst_40 : f32 to vector<4x128xf32>
      %c0_41 = arith.constant 0 : index
      %c0_42 = arith.constant 0 : index
      %c0_43 = arith.constant 0 : index
      %c0_44 = arith.constant 0 : index
      %39 = vector.load %arg6[%c0_41, %c0_42, %c0_43, %c0_44] : memref<1x1x4x128xf32, #tpu.memory_space<vmem>>, vector<1x1x4x128xf32>
      %40 = vector.shape_cast %39 : vector<1x1x4x128xf32> to vector<4x128xf32>
      %41 = vector.shape_cast %38 : vector<4x128xf32> to vector<1x1x4x128xf32>
      tpu.vector_store %arg6[%c0_41, %c0_42, %c0_43, %c0_44], %41 {strides = array<i32>} : memref<1x1x4x128xf32, #tpu.memory_space<vmem>>, vector<1x1x4x128xf32>,
      %cst_45 = arith.constant 0.000000e+00 : f32
      %42 = vector.broadcast %cst_45 : f32 to vector<4x128xf32>
      %c0_46 = arith.constant 0 : index
      %c0_47 = arith.constant 0 : index
      %c0_48 = arith.constant 0 : index
      %c0_49 = arith.constant 0 : index
      %43 = vector.load %arg7[%c0_46, %c0_47, %c0_48, %c0_49] : memref<1x1x4x128xf32, #tpu.memory_space<vmem>>, vector<1x1x4x128xf32>
      %44 = vector.shape_cast %43 : vector<1x1x4x128xf32> to vector<4x128xf32>
      %45 = vector.shape_cast %42 : vector<4x128xf32> to vector<1x1x4x128xf32>
      tpu.vector_store %arg7[%c0_46, %c0_47, %c0_48, %c0_49], %45 {strides = array<i32>} : memref<1x1x4x128xf32, #tpu.memory_space<vmem>>, vector<1x1x4x128xf32>,
    } else {
    }
    %c0 = arith.constant 0 : index
    %c0_1 = arith.constant 0 : index
    %c0_2 = arith.constant 0 : index
    %c0_3 = arith.constant 0 : index
    %3 = vector.load %arg3[%c0, %c0_1, %c0_2, %c0_3] : memref<1x4x2x128xf32, #tpu.memory_space<vmem>>, vector<1x4x2x128xf32>
    %4 = vector.shape_cast %3 : vector<1x4x2x128xf32> to vector<4x2x128xf32>
    %c0_4 = arith.constant 0 : index
    %c0_5 = arith.constant 0 : index
    %c0_6 = arith.constant 0 : index
    %c0_7 = arith.constant 0 : index
    %5 = vector.load %arg4[%c0_4, %c0_5, %c0_6, %c0_7] : memref<1x4x2x128xf32, #tpu.memory_space<vmem>>, vector<1x4x2x128xf32>
    %6 = vector.shape_cast %5 : vector<1x4x2x128xf32> to vector<4x2x128xf32>
    %7 = arith.negf %4 : vector<4x2x128xf32>
    %8 = math.exp %7 : vector<4x2x128xf32>
    %cst = arith.constant 1.000000e+00 : f32
    %9 = vector.broadcast %cst : f32 to vector<4x2x128xf32>
    %10 = arith.addf %9, %8 : vector<4x2x128xf32>
    %11 = arith.divf %9, %10 : vector<4x2x128xf32>
    %c0_8 = arith.constant 0 : index
    %c0_9 = arith.constant 0 : index
    %c0_10 = arith.constant 0 : index
    %c0_11 = arith.constant 0 : index
    %12 = vector.load %arg5[%c0_8, %c0_9, %c0_10, %c0_11] : memref<1x1x4x128xf32, #tpu.memory_space<vmem>>, vector<1x1x4x128xf32>
    %13 = vector.shape_cast %12 : vector<1x1x4x128xf32> to vector<4x128xf32>
    %cst_12 = arith.constant dense<0.000000e+00> : vector<4x128xf32>
    %14 = vector.multi_reduction <add>, %6, %cst_12 [1] : vector<4x2x128xf32> to vector<4x128xf32>
    %15 = arith.addf %13, %14 : vector<4x128xf32>
    %c0_13 = arith.constant 0 : index
    %c0_14 = arith.constant 0 : index
    %c0_15 = arith.constant 0 : index
    %c0_16 = arith.constant 0 : index
    %16 = vector.load %arg5[%c0_13, %c0_14, %c0_15, %c0_16] : memref<1x1x4x128xf32, #tpu.memory_space<vmem>>, vector<1x1x4x128xf32>
    %17 = vector.shape_cast %16 : vector<1x1x4x128xf32> to vector<4x128xf32>
    %18 = vector.shape_cast %15 : vector<4x128xf32> to vector<1x1x4x128xf32>
    tpu.vector_store %arg5[%c0_13, %c0_14, %c0_15, %c0_16], %18 {strides = array<i32>} : memref<1x1x4x128xf32, #tpu.memory_space<vmem>>, vector<1x1x4x128xf32>,
    %c0_17 = arith.constant 0 : index
    %c0_18 = arith.constant 0 : index
    %c0_19 = arith.constant 0 : index
    %c0_20 = arith.constant 0 : index
    %19 = vector.load %arg6[%c0_17, %c0_18, %c0_19, %c0_20] : memref<1x1x4x128xf32, #tpu.memory_space<vmem>>, vector<1x1x4x128xf32>
    %20 = vector.shape_cast %19 : vector<1x1x4x128xf32> to vector<4x128xf32>
    %21 = arith.mulf %11, %6 : vector<4x2x128xf32>
    %cst_21 = arith.constant dense<0.000000e+00> : vector<4x128xf32>
    %22 = vector.multi_reduction <add>, %21, %cst_21 [1] : vector<4x2x128xf32> to vector<4x128xf32>
    %23 = arith.addf %20, %22 : vector<4x128xf32>
    %c0_22 = arith.constant 0 : index
    %c0_23 = arith.constant 0 : index
    %c0_24 = arith.constant 0 : index
    %c0_25 = arith.constant 0 : index
    %24 = vector.load %arg6[%c0_22, %c0_23, %c0_24, %c0_25] : memref<1x1x4x128xf32, #tpu.memory_space<vmem>>, vector<1x1x4x128xf32>
    %25 = vector.shape_cast %24 : vector<1x1x4x128xf32> to vector<4x128xf32>
    %26 = vector.shape_cast %23 : vector<4x128xf32> to vector<1x1x4x128xf32>
    tpu.vector_store %arg6[%c0_22, %c0_23, %c0_24, %c0_25], %26 {strides = array<i32>} : memref<1x1x4x128xf32, #tpu.memory_space<vmem>>, vector<1x1x4x128xf32>,
    %c0_26 = arith.constant 0 : index
    %c0_27 = arith.constant 0 : index
    %c0_28 = arith.constant 0 : index
    %c0_29 = arith.constant 0 : index
    %27 = vector.load %arg7[%c0_26, %c0_27, %c0_28, %c0_29] : memref<1x1x4x128xf32, #tpu.memory_space<vmem>>, vector<1x1x4x128xf32>
    %28 = vector.shape_cast %27 : vector<1x1x4x128xf32> to vector<4x128xf32>
    %cst_30 = arith.constant dense<0.000000e+00> : vector<4x128xf32>
    %29 = vector.multi_reduction <add>, %11, %cst_30 [1] : vector<4x2x128xf32> to vector<4x128xf32>
    %30 = arith.addf %28, %29 : vector<4x128xf32>
    %c0_31 = arith.constant 0 : index
    %c0_32 = arith.constant 0 : index
    %c0_33 = arith.constant 0 : index
    %c0_34 = arith.constant 0 : index
    %31 = vector.load %arg7[%c0_31, %c0_32, %c0_33, %c0_34] : memref<1x1x4x128xf32, #tpu.memory_space<vmem>>, vector<1x1x4x128xf32>
    %32 = vector.shape_cast %31 : vector<1x1x4x128xf32> to vector<4x128xf32>
    %33 = vector.shape_cast %30 : vector<4x128xf32> to vector<1x1x4x128xf32>
    tpu.vector_store %arg7[%c0_31, %c0_32, %c0_33, %c0_34], %33 {strides = array<i32>} : memref<1x1x4x128xf32, #tpu.memory_space<vmem>>, vector<1x1x4x128xf32>,
    return
  }
  func.func @transform_0(%arg0: i32, %arg1: i32, %arg2: i32) -> (i32, i32, i32, i32) {
    %c1_i32 = arith.constant 1 : i32
    %0 = arith.muli %arg0, %c1_i32 : i32
    %1 = arith.addi %0, %arg2 : i32
    %c0_i32 = arith.constant 0 : i32
    %2 = arith.minsi %1, %c0_i32 : i32
    %c0_i32_0 = arith.constant 0 : i32
    %c0_i32_1 = arith.constant 0 : i32
    %c0_i32_2 = arith.constant 0 : i32
    return %arg1, %c0_i32_0, %2, %c0_i32_1 : i32, i32, i32, i32
  }
  func.func @transform_1(%arg0: i32, %arg1: i32, %arg2: i32) -> (i32, i32, i32, i32) {
    %c1_i32 = arith.constant 1 : i32
    %0 = arith.muli %arg0, %c1_i32 : i32
    %1 = arith.addi %0, %arg2 : i32
    %c0_i32 = arith.constant 0 : i32
    %2 = arith.minsi %1, %c0_i32 : i32
    %c0_i32_0 = arith.constant 0 : i32
    %c0_i32_1 = arith.constant 0 : i32
    %c0_i32_2 = arith.constant 0 : i32
    return %arg1, %c0_i32_0, %2, %c0_i32_1 : i32, i32, i32, i32
  }
  func.func @transform_2(%arg0: i32, %arg1: i32, %arg2: i32) -> (i32, i32, i32, i32) {
    %c0_i32 = arith.constant 0 : i32
    %c0_i32_0 = arith.constant 0 : i32
    %c0_i32_1 = arith.constant 0 : i32
    return %arg0, %arg1, %c0_i32, %c0_i32_0 : i32, i32, i32, i32
  }
  func.func @transform_3(%arg0: i32, %arg1: i32, %arg2: i32) -> (i32, i32, i32, i32) {
    %c0_i32 = arith.constant 0 : i32
    %c0_i32_0 = arith.constant 0 : i32
    %c0_i32_1 = arith.constant 0 : i32
    return %arg0, %arg1, %c0_i32, %c0_i32_0 : i32, i32, i32, i32
  }
  func.func @transform_4(%arg0: i32, %arg1: i32, %arg2: i32) -> (i32, i32, i32, i32) {
    %c0_i32 = arith.constant 0 : i32
    %c0_i32_0 = arith.constant 0 : i32
    %c0_i32_1 = arith.constant 0 : i32
    return %arg0, %arg1, %c0_i32, %c0_i32_0 : i32, i32, i32, i32
  }
}

</mosaic_0001>

<bundles_post_ra>
// kernel: generalized_dice_loss.1
= control target key start
LH: loop header
LB: loop body
LE: loop exit
PB: predicated region body
PF: predicated region fallthrough
CT: control target
= control target key end

     0   :  { %s823_s15 = smov 0   ;;  %s825_s16 = smov 0   ;;  %s917_s0 = inlined_call_operand.vmem [shape: f32[2,4,2,128], index: 0, kind: input, shape index: {}]   ;;  %s918_s1 = inlined_call_operand.vmem [shape: f32[2,4,2,128], index: 1, kind: input, shape index: {}]   ;;  %s919_s2 = inlined_call_operand.vmem [shape: f32[1,2,4,128], index: 2, kind: output, shape index: {0}]   ;;  %s920_s3 = inlined_call_operand.vmem [shape: f32[1,2,4,128], index: 3, kind: output, shape index: {1}]   ;;  %s921_s4 = inlined_call_operand.vmem [shape: f32[1,2,4,128], index: 4, kind: output, shape index: {2}]  }
   0x1   :  { %s827_s17 = smov 0  }
   0x2 LB: > { %s30_s18 = sadd.s32 1, %s791_s16  ;;  %p716_p0 = scmp.ge.s32.totalorder %s795_s17, 1  ;;  %s795_s17 = sphi %s827_s17, %s15_s17   ;;  %s791_s16 = sphi %s825_s16, %s923_s16   ;;  %s787_s15 = sphi %s823_s15, %s922_s15  }
   0x3   : > { %p32_p1 = scmp.ge.s32.totalorder %s30_s18, 2  ;;  %p236_p2 = scmp.lt.s32.totalorder %s795_s17, 3 }
   0x5   : > { %s925_s18 = smov (%p32_p1, %s30_s18), 0  ;;  %p237_p3 = pnand %p716_p0, %p236_p2 }
   0x6   : > { %p301_p4 = scmp.lt.s32.totalorder (!%p237_p3), %s787_s15, 1  ;;  %v797_v3 = vmov (!%p237_p3), 0.0   ;;  %vm390_vm0 = vcmask (!%p237_p3), 1041408   ;;  %vm423_vm1 = vcmask (!%p237_p3), 1041409   ;;  %vm425_vm2 = vcmask (!%p237_p3), 1042434  }
   0x7   : > { %240 = sbr.rel (%p237_p3) target bundleno = 70 (0x46), region = 28  ;;  %vm427_vm3 = vcmask (!%p237_p3), 1043459  }
   0xe   : > { %s927_s15 = smov (!%p301_p4, %s787_s15), 1 }
   0xf   : > { %s730_s19 = sshll.u32 %s927_s15, 3  ;;  %s721_s20 = sshll.u32 %s927_s15, 2 }
  0x10   : > { %s308_s23 = scalar_lea.vmem %s917_s0, %s730_s19  ;;  %s322_s26 = scalar_lea.vmem %s918_s1, %s730_s19 }
  0x11   : > { %s850_s29 = scalar_lea.vmem %s919_s2, %s721_s20  ;;  %v357_v0 = vld [vmem:[%s308_s23] sm:$0x3]  ;;  %v358_v1 = vld [vmem:[%s308_s23 + $0x2] sm:$0x3]  ;;  %v359_v2 = vld [vmem:[%s308_s23 + $0x4] sm:$0x3]  ;;  %s855_s6 = scalar_lea.vmem %s920_s3, %s721_s20 }
  0x12   : > { %354 = vst [vmem:[%s850_s29] sm:$0xf] %v797_v3  ;;  %v360_v4 = vld [vmem:[%s308_s23 + $0x6] sm:$0x3]  ;;  %v858_v5 = vld [vmem:[%s322_s26] sm:$0x3]  ;;  %355 = vst [vmem:[%s855_s6] sm:$0xf] %v797_v3  ;;  %s864_s9 = scalar_lea.vmem %s921_s4, %s721_s20 }
  0x13   : > { %v866_v6 = vld [vmem:[%s322_s26 + $0x2] sm:$0x3]  ;;  %v868_v7 = vld [vmem:[%s322_s26 + $0x4] sm:$0x3]  ;;  %v724_v8 = vmul.f32 -1.442695, %v357_v0 }
  0x14   : > { %356 = vst [vmem:[%s864_s9] sm:$0xf] %v797_v3  ;;  %v725_v9 = vmul.f32 -1.442695, %v358_v1  ;;  %v726_v10 = vmul.f32 -1.442695, %v359_v2  ;;  %v391_v12 = vsel %vm390_vm0, %v858_v5, 0.0 }
  0x15   : > { %v727_v11 = vmul.f32 -1.442695, %v360_v4  ;;  %757 = vpow2.f32 %v724_v8  ;;  %v398_v13 = vsel %vm390_vm0, %v866_v6, 0.0  ;;  %v405_v14 = vsel %vm390_vm0, %v868_v7, 0.0  ;;  %v877_v15 = vld [vmem:[%s322_s26 + $0x6] sm:$0x3] }
  0x16   : > { %759 = vpow2.f32 %v725_v9  ;;  %v392_v16 = vrot.slane %v391_v12, 4  ;;  %v399_v17 = vrot.slane %v398_v13, 4  ;;  %v406_v18 = vrot.slane %v405_v14, 4 }
  0x17   : > { %761 = vpow2.f32 %v726_v10  ;;  %v412_v19 = vsel %vm390_vm0, %v877_v15, 0.0 }
  0x18   : > { %763 = vpow2.f32 %v727_v11  ;;  %v393_v20 = vadd.f32 %v392_v16, %v391_v12  ;;  %v400_v21 = vadd.f32 %v399_v17, %v398_v13  ;;  %v407_v22 = vadd.f32 %v406_v18, %v405_v14 }
  0x19   : > { %v413_v23 = vrot.slane %v412_v19, 4  ;;  %v389_v49 = vld [vmem:[%s850_s29] sm:$0xf] }
  0x1a   : > { %v394_v24 = vrot.slane %v393_v20, 2  ;;  %v401_v25 = vrot.slane %v400_v21, 2  ;;  %v408_v26 = vrot.slane %v407_v22, 2 }
  0x1b   : > { %v414_v27 = vadd.f32 %v413_v23, %v412_v19 }
  0x1c   : > { %v395_v28 = vadd.f32 %v394_v24, %v393_v20  ;;  %v402_v29 = vadd.f32 %v401_v25, %v400_v21  ;;  %v409_v30 = vadd.f32 %v408_v26, %v407_v22 }
  0x1d   : > { %v415_v31 = vrot.slane %v414_v27, 2 }
  0x1e   : > { %v396_v32 = vrot.slane %v395_v28, 1  ;;  %v403_v33 = vrot.slane %v402_v29, 1  ;;  %v410_v34 = vrot.slane %v409_v30, 1 }
  0x1f   : > { %v758_v35 = vpop.eup %757  ;;  %v416_v36 = vadd.f32 %v415_v31, %v414_v27 }
  0x20   : > { %v760_v37 = vpop.eup %759  ;;  %v377_v38 = vadd.f32 1.0, %v758_v35  ;;  %v397_v39 = vadd.f32 %v396_v32, %v395_v28  ;;  %v404_v40 = vadd.f32 %v403_v33, %v402_v29  ;;  %v411_v41 = vadd.f32 %v410_v34, %v409_v30 }
  0x21   : > { %v762_v42 = vpop.eup %761  ;;  %v378_v43 = vadd.f32 1.0, %v760_v37  ;;  %v417_v44 = vrot.slane %v416_v36, 1 }
  0x22   : > { %v764_v45 = vpop.eup %763  ;;  %v379_v46 = vadd.f32 1.0, %v762_v42  ;;  %765 = vrcp.f32 %v377_v38  ;;  %v424_v47 = vsel %vm423_vm1, %v404_v40, %v397_v39 }
  0x23   : > { %v380_v48 = vadd.f32 1.0, %v764_v45  ;;  %767 = vrcp.f32 %v378_v43  ;;  %v418_v50 = vadd.f32 %v417_v44, %v416_v36  ;;  %v426_v51 = vsel %vm425_vm2, %v411_v41, %v424_v47 }
  0x24   : > { %769 = vrcp.f32 %v379_v46 }
  0x25   : > { %771 = vrcp.f32 %v380_v48  ;;  %v428_v52 = vsel %vm427_vm3, %v418_v50, %v426_v51 }
  0x26   : > { %v430_v53 = vadd.f32 %v428_v52, %v389_v49  ;;  %v432_v52 = vld [vmem:[%s855_s6] sm:$0xf] }
  0x28   : > { %431 = vst [vmem:[%s850_s29] sm:$0xf] %v430_v53 }
  0x2c   : > { %v766_v54 = vpop.eup %765 }
  0x2d   : > { %v768_v55 = vpop.eup %767  ;;  %v433_v56 = vmul.f32 %v766_v54, %v858_v5  ;;  %v476_v57 = vsel %vm390_vm0, %v766_v54, 0.0 }
  0x2e   : > { %v770_v58 = vpop.eup %769  ;;  %v434_v59 = vmul.f32 %v768_v55, %v866_v6  ;;  %v477_v60 = vrot.slane %v476_v57, 4  ;;  %v483_v61 = vsel %vm390_vm0, %v768_v55, 0.0 }
  0x2f   : > { %v772_v62 = vpop.eup %771  ;;  %v435_v63 = vmul.f32 %v770_v58, %v868_v7  ;;  %v437_v0 = vsel %vm390_vm0, %v433_v56, 0.0  ;;  %v484_v1 = vrot.slane %v483_v61, 4  ;;  %v490_v2 = vsel %vm390_vm0, %v770_v58, 0.0 }
  0x30   : > { %v436_v3 = vmul.f32 %v772_v62, %v877_v15  ;;  %v438_v4 = vrot.slane %v437_v0, 4  ;;  %v444_v5 = vsel %vm390_vm0, %v434_v59, 0.0  ;;  %v478_v8 = vadd.f32 %v477_v60, %v476_v57  ;;  %v475_v60 = vld [vmem:[%s864_s9] sm:$0xf] }
  0x31   : > { %v445_v9 = vrot.slane %v444_v5, 4  ;;  %v451_v6 = vsel %vm390_vm0, %v435_v63, 0.0  ;;  %v485_v10 = vadd.f32 %v484_v1, %v483_v61  ;;  %v491_v11 = vrot.slane %v490_v2, 4 }
  0x32   : > { %v439_v12 = vadd.f32 %v438_v4, %v437_v0  ;;  %v452_v13 = vrot.slane %v451_v6, 4  ;;  %v458_v7 = vsel %vm390_vm0, %v436_v3, 0.0  ;;  %v479_v14 = vrot.slane %v478_v8, 2 }
  0x33   : > { %v446_v16 = vadd.f32 %v445_v9, %v444_v5  ;;  %v459_v17 = vrot.slane %v458_v7, 4  ;;  %v486_v18 = vrot.slane %v485_v10, 2  ;;  %v492_v19 = vadd.f32 %v491_v11, %v490_v2 }
  0x34   : > { %v440_v20 = vrot.slane %v439_v12, 2  ;;  %v453_v15 = vadd.f32 %v452_v13, %v451_v6  ;;  %v480_v21 = vadd.f32 %v479_v14, %v478_v8  ;;  %v497_v22 = vsel %vm390_vm0, %v772_v62, 0.0 }
  0x35   : > { %v447_v23 = vrot.slane %v446_v16, 2  ;;  %v460_v24 = vadd.f32 %v459_v17, %v458_v7  ;;  %v487_v25 = vadd.f32 %v486_v18, %v485_v10  ;;  %v493_v26 = vrot.slane %v492_v19, 2 }
  0x36   : > { %v441_v27 = vadd.f32 %v440_v20, %v439_v12  ;;  %v454_v28 = vrot.slane %v453_v15, 2  ;;  %v481_v29 = vrot.slane %v480_v21, 1  ;;  %v498_v30 = vrot.slane %v497_v22, 4 }
  0x37   : > { %v448_v31 = vadd.f32 %v447_v23, %v446_v16  ;;  %v461_v32 = vrot.slane %v460_v24, 2  ;;  %v488_v33 = vrot.slane %v487_v25, 1  ;;  %v494_v34 = vadd.f32 %v493_v26, %v492_v19 }
  0x38   : > { %v442_v35 = vrot.slane %v441_v27, 1  ;;  %v455_v36 = vadd.f32 %v454_v28, %v453_v15  ;;  %v482_v37 = vadd.f32 %v481_v29, %v480_v21  ;;  %v499_v38 = vadd.f32 %v498_v30, %v497_v22 }
  0x39   : > { %v449_v39 = vrot.slane %v448_v31, 1  ;;  %v462_v40 = vadd.f32 %v461_v32, %v460_v24  ;;  %v489_v41 = vadd.f32 %v488_v33, %v487_v25  ;;  %v495_v42 = vrot.slane %v494_v34, 1 }
  0x3a   : > { %v443_v43 = vadd.f32 %v442_v35, %v441_v27  ;;  %v456_v44 = vrot.slane %v455_v36, 1  ;;  %v500_v45 = vrot.slane %v499_v38, 2 }
  0x3b   : > { %v450_v46 = vadd.f32 %v449_v39, %v448_v31  ;;  %v463_v47 = vrot.slane %v462_v40, 1  ;;  %v496_v48 = vadd.f32 %v495_v42, %v494_v34  ;;  %v508_v51 = vsel %vm423_vm1, %v489_v41, %v482_v37 }
  0x3c   : > { %v457_v49 = vadd.f32 %v456_v44, %v455_v36  ;;  %v501_v50 = vadd.f32 %v500_v45, %v499_v38 }
  0x3d   : > { %v464_v53 = vadd.f32 %v463_v47, %v462_v40  ;;  %v469_v54 = vsel %vm423_vm1, %v450_v46, %v443_v43  ;;  %v509_v58 = vsel %vm425_vm2, %v496_v48, %v508_v51 }
  0x3e   : > { %v470_v55 = vsel %vm425_vm2, %v457_v49, %v469_v54  ;;  %v502_v56 = vrot.slane %v501_v50, 1 }
  0x3f   : > { %v471_v57 = vsel %vm427_vm3, %v464_v53, %v470_v55 }
  0x40   : > { %v473_v59 = vadd.f32 %v471_v57, %v432_v52  ;;  %v503_v61 = vadd.f32 %v502_v56, %v501_v50 }
  0x42   : > { %474 = vst [vmem:[%s855_s6] sm:$0xf] %v473_v59  ;;  %v510_v62 = vsel %vm427_vm3, %v503_v61, %v509_v58 }
  0x43   : > { %v512_v63 = vadd.f32 %v510_v62, %v475_v60 }
  0x45   : > { %513 = vst [vmem:[%s864_s9] sm:$0xf] %v512_v63 }
  0x46 PF: > { %s15_s17 = sadd.s32 1, %s795_s17   ;;  %s922_s15 = smov %s791_s16 }
  0x47   : > { %p12_p5 = scmp.ge.s32.totalorder %s15_s17, 4   ;;  %s923_s16 = smov %s925_s18 }
  0x49   :  { %14 = sbr.rel (!%p12_p5) target bundleno = 2 (0x2), region = 89 }

</bundles_post_ra>
